<compile_context>
chip_gen: v7x
topology: tpu7x:2x2x1
jax: 0.10.0
libtpu: 0.0.40
codegen_flags: <defaults>
</compile_context>

<pallas_src>
import functools
import math

import jax
import jax.numpy as jnp
from jax.experimental import pallas as pl
from jax.experimental.pallas import tpu as pltpu

_VMEM_LIMIT = 64 * 1024 * 1024  # explicit scoped-VMEM cap (safe on v5e/v6e/v7x)


# ----------------------------- helpers -------------------------------------

def _row_tile(rows, cap=512):
    """Row tile: full array when small, else a 512-row tile (multiple of 8).

    The grids below use pl.cdiv, so non-divisible row counts get a masked tail
    block (row-wise kernels tolerate garbage in the padded rows; their writes
    are dropped)."""
    if rows <= cap:
        return rows
    return cap


def _q_tile(seq, cap=256):
    """Query tile for attention (multiple of 8 when it does not cover seq)."""
    if seq <= cap:
        return seq
    return cap


# ----------------------------- Pallas kernels ------------------------------

def _ln_qkv_kernel(x_ref, g_ref, b_ref, w_ref, wb_ref, o_ref, *, eps):
    """LayerNorm1 fused with the QKV in-projection: o = LN(x) @ Wqkv^T + bqkv."""
    x = x_ref[...]                                        # (T, E) f32
    mean = jnp.mean(x, axis=-1, keepdims=True)
    xc = x - mean
    var = jnp.mean(xc * xc, axis=-1, keepdims=True)
    xn = xc * jax.lax.rsqrt(var + eps) * g_ref[...] + b_ref[...]
    y = (jnp.dot(xn.astype(jnp.bfloat16), w_ref[...],
                 preferred_element_type=jnp.float32)
         + wb_ref[...])
    o_ref[...] = y.astype(o_ref.dtype)                    # bf16 store


def _attn_kernel(q_ref, kv_ref, o_ref, attn_ref, *, nhead, head_dim, d_model,
                 scale):
    """Multi-head attention for all batches, one query tile per grid step.

    q_ref : (tq, N, 3E) bf16 query tile (only the first E lanes are used)
    kv_ref: (L,  N, 3E) bf16 full sequence (grid-invariant, stays resident)
    o_ref : (tq, N, E)  bf16 merged-head output (l-major, no transpose needed)
    attn  : (N, tq, L)  f32 head-mean attention probabilities
    """
    tq, n, _ = q_ref.shape
    seq = kv_ref.shape[0]

    q = q_ref[:, :, :d_model]                             # (tq, N, E) bf16
    k = kv_ref[:, :, d_model:2 * d_model]                 # (L,  N, E) bf16
    v = kv_ref[:, :, 2 * d_model:]                        # (L,  N, E) bf16

    def to_heads(x, s):
        # (s, N, E) -> (N*H, s, hd); minor dim stays minor (cheap relayout).
        x4 = x.reshape(s, n, nhead, head_dim)
        return jnp.transpose(x4, (1, 2, 0, 3)).reshape(n * nhead, s, head_dim)

    qh = to_heads(q, tq)
    kh = to_heads(k, seq)
    vh = to_heads(v, seq)

    # Batched over (batch*head): one MXU pipeline instead of nhead short matmuls.
    s = jnp.einsum('bqd,bkd->bqk', qh, kh,
                   preferred_element_type=jnp.float32) * scale   # (NH, tq, L)
    s = s - jnp.max(s, axis=-1, keepdims=True)
    e = jnp.exp(s)
    p = e * pl.reciprocal(jnp.sum(e, axis=-1, keepdims=True), approx=True)

    # Head-mean attention, accumulated in-kernel (never materializes NH x L x L in HBM).
    attn_ref[...] = jnp.mean(p.reshape(n, nhead, tq, seq), axis=1)

    o = jnp.einsum('bqk,bkd->bqd', p.astype(jnp.bfloat16), vh,
                   preferred_element_type=jnp.float32)           # (NH, tq, hd)
    o = jnp.transpose(o.reshape(n, nhead, tq, head_dim), (2, 0, 1, 3))
    o_ref[...] = o.reshape(tq, n, d_model).astype(o_ref.dtype)   # bf16 store


def _proj_ffn_kernel(o_ref, res_ref, wo_ref, bo_ref, g2_ref, be2_ref,
                     w1_ref, b1_ref, w2_ref, b2_ref, out_ref, *, eps):
    """out-proj + residual + LayerNorm2 + Linear/ReLU/Linear + residual."""
    x = (res_ref[...]
         + jnp.dot(o_ref[...], wo_ref[...],               # o already bf16
                   preferred_element_type=jnp.float32)
         + bo_ref[...])
    mean = jnp.mean(x, axis=-1, keepdims=True)
    xc = x - mean
    var = jnp.mean(xc * xc, axis=-1, keepdims=True)
    xn = xc * jax.lax.rsqrt(var + eps) * g2_ref[...] + be2_ref[...]
    h = (jnp.dot(xn.astype(jnp.bfloat16), w1_ref[...],
                 preferred_element_type=jnp.float32) + b1_ref[...])
    h = jnp.maximum(h, 0.0)                               # relu
    out_ref[...] = (x
                    + jnp.dot(h.astype(jnp.bfloat16), w2_ref[...],
                              preferred_element_type=jnp.float32)
                    + b2_ref[...])


# ----------------------------- wrappers -------------------------------------

def ln_qkv(x, gamma, beta, w_bf16, bias, eps=1e-5):
    rows, e = x.shape
    n_out = w_bf16.shape[1]
    t = _row_tile(rows)
    return pl.pallas_call(
        functools.partial(_ln_qkv_kernel, eps=eps),
        grid=(pl.cdiv(rows, t),),
        in_specs=[
            pl.BlockSpec((t, e), lambda i: (i, 0)),
            pl.BlockSpec((1, e), lambda i: (0, 0)),
            pl.BlockSpec((1, e), lambda i: (0, 0)),
            pl.BlockSpec((e, n_out), lambda i: (0, 0)),
            pl.BlockSpec((1, n_out), lambda i: (0, 0)),
        ],
        out_specs=pl.BlockSpec((t, n_out), lambda i: (i, 0)),
        out_shape=jax.ShapeDtypeStruct((rows, n_out), jnp.bfloat16),
        compiler_params=pltpu.CompilerParams(
            dimension_semantics=("parallel",),
            vmem_limit_bytes=_VMEM_LIMIT),
    )(x, gamma, beta, w_bf16, bias)


def mha(qkv_bm, batch, seq, d_model, nhead):
    """qkv_bm: (L*N, 3E) bf16, l-major rows.  Returns ((L*N, E) bf16, (N, L, L) f32)."""
    e3 = qkv_bm.shape[-1]
    qkv3 = qkv_bm.reshape(seq, batch, e3)                 # free reshape (l-major)
    head_dim = d_model // nhead
    scale = 1.0 / math.sqrt(head_dim)
    tq = _q_tile(seq)
    o, attn = pl.pallas_call(
        functools.partial(_attn_kernel, nhead=nhead, head_dim=head_dim,
                          d_model=d_model, scale=scale),
        grid=(pl.cdiv(seq, tq),),
        in_specs=[
            pl.BlockSpec((tq, batch, e3), lambda i: (i, 0, 0)),   # query tile
            pl.BlockSpec((seq, batch, e3), lambda i: (0, 0, 0)),  # K/V resident
        ],
        out_specs=[
            pl.BlockSpec((tq, batch, d_model), lambda i: (i, 0, 0)),
            pl.BlockSpec((batch, tq, seq), lambda i: (0, i, 0)),
        ],
        out_shape=(jax.ShapeDtypeStruct((seq, batch, d_model), jnp.bfloat16),
                   jax.ShapeDtypeStruct((batch, seq, seq), jnp.float32)),
        compiler_params=pltpu.CompilerParams(
            dimension_semantics=("parallel",),
            vmem_limit_bytes=_VMEM_LIMIT),
    )(qkv3, qkv3)
    return o.reshape(seq * batch, d_model), attn


def proj_ffn(o, res, wo_bf16, bo, g2, be2, w1_bf16, b1, w2_bf16, b2, eps=1e-5):
    rows, e = o.shape
    f = w1_bf16.shape[1]
    t = _row_tile(rows)

    def row(d):
        return pl.BlockSpec((t, d), lambda i: (i, 0))

    def full(shape):
        return pl.BlockSpec(shape, lambda i: (0, 0))

    return pl.pallas_call(
        functools.partial(_proj_ffn_kernel, eps=eps),
        grid=(pl.cdiv(rows, t),),
        in_specs=[row(e), row(e),
                  full((e, e)), full((1, e)),
                  full((1, e)), full((1, e)),
                  full((e, f)), full((1, f)),
                  full((f, e)), full((1, e))],
        out_specs=row(e),
        out_shape=jax.ShapeDtypeStruct((rows, e), jnp.float32),
        compiler_params=pltpu.CompilerParams(
            dimension_semantics=("parallel",),
            vmem_limit_bytes=_VMEM_LIMIT),
    )(o, res, wo_bf16, bo, g2, be2, w1_bf16, b1, w2_bf16, b2)


def transformer_encoder_layer(src, params, pos=None):
    """Pre-norm transformer encoder layer.  src: (L, N, E).  Returns (out, attention)."""
    if pos is not None:
        # TODO(synk): with_pos_embed (pos != None) is not wired into the fused LN+QKV kernel.
        raise NotImplementedError("pos embedding not supported in fused kernels")

    L, N, E = src.shape
    H = params["nhead"]
    assert E % H == 0

    # l-major token rows (row = l*N + n): just a reshape, no transpose.
    src_bm = src.reshape(L * N, E)

    # LN1 + fused QKV projection  ->  (L*N, 3E) bf16
    qkv = ln_qkv(src_bm, params["ln1_g"], params["ln1_b"],
                 params["wqkv_t_bf16"], params["bqkv"])

    # multi-head attention (merged-head output bf16, head-mean attention weights)
    o_bm, attention = mha(qkv, N, L, E, H)

    # out-proj + residual + LN2 + FFN + residual (dropouts are identity in eval)
    out_bm = proj_ffn(o_bm, src_bm,
                      params["wo_t_bf16"], params["bo"],
                      params["ln2_g"], params["ln2_b"],
                      params["w1_t_bf16"], params["b1"],
                      params["w2_t_bf16"], params["b2"])

    out = out_bm.reshape(L, N, E)                         # no transpose needed
    return out, attention


# ----------------------------- params & reference ---------------------------

def init_params(key, d_model, nhead, dim_feedforward):
    ks = jax.random.split(key, 8)
    s = 0.1
    E, Fd = d_model, dim_feedforward
    in_w = jax.random.normal(ks[0], (3 * E, E), jnp.float32) * s
    in_b = jax.random.normal(ks[1], (3 * E,), jnp.float32) * s
    wo = jax.random.normal(ks[2], (E, E), jnp.float32) * s
    bo = jax.random.normal(ks[3], (E,), jnp.float32) * s
    w1 = jax.random.normal(ks[4], (Fd, E), jnp.float32) * s
    b1 = jax.random.normal(ks[5], (Fd,), jnp.float32) * s
    w2 = jax.random.normal(ks[6], (E, Fd), jnp.float32) * s
    b2 = jax.random.normal(ks[7], (E,), jnp.float32) * s

    wq_t, wk_t, wv_t = in_w[:E].T, in_w[E:2 * E].T, in_w[2 * E:].T
    return {
        "nhead": nhead,
        # f32 weights (used by the pure-jnp reference)
        "wq_t": wq_t, "bq": in_b[:E].reshape(1, E),
        "wk_t": wk_t, "bk": in_b[E:2 * E].reshape(1, E),
        "wv_t": wv_t, "bv": in_b[2 * E:].reshape(1, E),
        "wo_t": wo.T, "bo": bo.reshape(1, E),
        "w1_t": w1.T, "b1": b1.reshape(1, Fd),
        "w2_t": w2.T, "b2": b2.reshape(1, E),
        "ln1_g": jnp.ones((1, E), jnp.float32), "ln1_b": jnp.zeros((1, E), jnp.float32),
        "ln2_g": jnp.ones((1, E), jnp.float32), "ln2_b": jnp.zeros((1, E), jnp.float32),
        # fused / bf16 weights consumed by the Pallas kernels
        "wqkv_t_bf16": jnp.concatenate([wq_t, wk_t, wv_t], axis=1).astype(jnp.bfloat16),
        "bqkv": in_b.reshape(1, 3 * E),
        "wo_t_bf16": wo.T.astype(jnp.bfloat16),
        "w1_t_bf16": w1.T.astype(jnp.bfloat16),
        "w2_t_bf16": w2.T.astype(jnp.bfloat16),
    }


def _reference(src, params, pos=None):
    # Pure-jnp f32 reference with identical math (for sanity checking kernels).
    L, N, E = src.shape
    H = params["nhead"]
    hd = E // H
    scale = 1.0 / math.sqrt(hd)

    def ln(x, g, b, eps=1e-5):
        mu = x.mean(-1, keepdims=True)
        var = ((x - mu) ** 2).mean(-1, keepdims=True)
        return (x - mu) / jnp.sqrt(var + eps) * g + b

    x = src.reshape(L * N, E)
    s2 = ln(x, params["ln1_g"], params["ln1_b"]).reshape(L, N, E)
    qk = s2 if pos is None else jnp.concatenate([s2[:1], s2[1:] + pos], axis=0)
    q = qk.reshape(L * N, E) @ params["wq_t"] + params["bq"]
    k = qk.reshape(L * N, E) @ params["wk_t"] + params["bk"]
    v = s2.reshape(L * N, E) @ params["wv_t"] + params["bv"]

    def heads(t):
        return t.reshape(L, N, H, hd).transpose(1, 2, 0, 3).reshape(N * H, L, hd)

    qh, kh, vh = heads(q), heads(k), heads(v)
    sc = jnp.einsum("bld,bmd->blm", qh * scale, kh)
    p = jax.nn.softmax(sc, axis=-1)
    o = jnp.einsum("blm,bmd->bld", p, vh)
    o = o.reshape(N, H, L, hd).transpose(2, 0, 1, 3).reshape(L * N, E)
    x = x + o @ params["wo_t"] + params["bo"]
    attn = p.reshape(N, H, L, L).mean(axis=1)
    s2 = ln(x, params["ln2_g"], params["ln2_b"])
    h = jnp.maximum(s2 @ params["w1_t"] + params["b1"], 0.0)
    x = x + h @ params["w2_t"] + params["b2"]
    return x.reshape(L, N, E), attn


# ----------------------------- main -----------------------------------------

if __name__ == "__main__":
    L, N, E = 8, 2, 32          # seq_len, batch, d_model
    H, F = 4, 64                # nhead, dim_feedforward

    key = jax.random.PRNGKey(0)
    k_src, k_par = jax.random.split(key)
    src = jax.random.normal(k_src, (L, N, E), jnp.float32)
    params = init_params(k_par, E, H, F)

    out, attention = transformer_encoder_layer(src, params, pos=None)
    out = jax.block_until_ready(out)
    attention = jax.block_until_ready(attention)

    ref_out, ref_attn = _reference(src, params, pos=None)
    assert out.shape == (L, N, E) and attention.shape == (N, L, L)
    assert jnp.allclose(out, ref_out, atol=1e-2, rtol=1e-2)
    assert jnp.allclose(attention, ref_attn, atol=1e-2, rtol=1e-2)

    print("KERNEL_OK")
</pallas_src>

<mosaic_0001>
module attributes {stable_mosaic.version = 11 : i64} {
  func.func @_ln_qkv_kernel(%arg0: i32, %arg1: memref<16x32xf32, #tpu.memory_space<vmem>>, %arg2: memref<1x32xf32, #tpu.memory_space<vmem>>, %arg3: memref<1x32xf32, #tpu.memory_space<vmem>>, %arg4: memref<32x96xbf16, #tpu.memory_space<vmem>>, %arg5: memref<1x96xf32, #tpu.memory_space<vmem>>, %arg6: memref<16x96xbf16, #tpu.memory_space<vmem>>) attributes {dimension_semantics = [#tpu.dimension_semantics<parallel>], iteration_bounds = array<i64: 1>, scalar_prefetch = 0 : i64, scratch_operands = 0 : i64, tpu.core_type = #tpu.core_type<tc>, window_params = [{transform_indices = @transform_0, window_bounds = array<i64: 16, 32>}, {pipeline_mode = #tpu.pipeline_mode<synchronous>, transform_indices = @transform_1, window_bounds = array<i64: 1, 32>}, {pipeline_mode = #tpu.pipeline_mode<synchronous>, transform_indices = @transform_2, window_bounds = array<i64: 1, 32>}, {pipeline_mode = #tpu.pipeline_mode<synchronous>, transform_indices = @transform_3, window_bounds = array<i64: 32, 96>}, {pipeline_mode = #tpu.pipeline_mode<synchronous>, transform_indices = @transform_4, window_bounds = array<i64: 1, 96>}, {transform_indices = @transform_5, window_bounds = array<i64: 16, 96>}]} {
    %c0 = arith.constant 0 : index
    %c0_0 = arith.constant 0 : index
    %0 = vector.load %arg1[%c0, %c0_0] : memref<16x32xf32, #tpu.memory_space<vmem>>, vector<16x32xf32>
    %cst = arith.constant dense<0.000000e+00> : vector<16xf32>
    %1 = vector.multi_reduction <add>, %0, %cst [1] : vector<16x32xf32> to vector<16xf32>
    %2 = vector.shape_cast %1 : vector<16xf32> to vector<16x1xf32>
    %cst_1 = arith.constant 3.200000e+01 : f32
    %3 = vector.broadcast %cst_1 : f32 to vector<16x1xf32>
    %4 = arith.divf %2, %3 : vector<16x1xf32>
    %5 = vector.broadcast %4 : vector<16x1xf32> to vector<16x32xf32>
    %6 = arith.subf %0, %5 : vector<16x32xf32>
    %7 = arith.mulf %6, %6 : vector<16x32xf32>
    %cst_2 = arith.constant dense<0.000000e+00> : vector<16xf32>
    %8 = vector.multi_reduction <add>, %7, %cst_2 [1] : vector<16x32xf32> to vector<16xf32>
    %9 = vector.shape_cast %8 : vector<16xf32> to vector<16x1xf32>
    %cst_3 = arith.constant 3.200000e+01 : f32
    %10 = vector.broadcast %cst_3 : f32 to vector<16x1xf32>
    %11 = arith.divf %9, %10 : vector<16x1xf32>
    %cst_4 = arith.constant 9.99999974E-6 : f32
    %12 = vector.broadcast %cst_4 : f32 to vector<16x1xf32>
    %13 = arith.addf %11, %12 : vector<16x1xf32>
    %14 = math.rsqrt %13 : vector<16x1xf32>
    %15 = vector.broadcast %14 : vector<16x1xf32> to vector<16x32xf32>
    %16 = arith.mulf %6, %15 : vector<16x32xf32>
    %c0_5 = arith.constant 0 : index
    %c0_6 = arith.constant 0 : index
    %17 = vector.load %arg2[%c0_5, %c0_6] : memref<1x32xf32, #tpu.memory_space<vmem>>, vector<1x32xf32>
    %18 = vector.broadcast %17 : vector<1x32xf32> to vector<16x32xf32>
    %19 = arith.mulf %16, %18 : vector<16x32xf32>
    %c0_7 = arith.constant 0 : index
    %c0_8 = arith.constant 0 : index
    %20 = vector.load %arg3[%c0_7, %c0_8] : memref<1x32xf32, #tpu.memory_space<vmem>>, vector<1x32xf32>
    %21 = vector.broadcast %20 : vector<1x32xf32> to vector<16x32xf32>
    %22 = arith.addf %19, %21 : vector<16x32xf32>
    %23 = arith.truncf %22 : vector<16x32xf32> to vector<16x32xbf16>
    %c0_9 = arith.constant 0 : index
    %c0_10 = arith.constant 0 : index
    %24 = vector.load %arg4[%c0_9, %c0_10] : memref<32x96xbf16, #tpu.memory_space<vmem>>, vector<32x96xbf16>
    %cst_11 = arith.constant dense<0.000000e+00> : vector<16x96xf32>
    %25 = tpu.matmul %23, %24, %cst_11 {dimension_numbers = #tpu.dot_dimension_numbers<[1], [0], [0], [1], [0, 0, 1, 1], [], []>} : vector<16x32xbf16>, vector<32x96xbf16>, vector<16x96xf32> -> vector<16x96xf32>
    %c0_12 = arith.constant 0 : index
    %c0_13 = arith.constant 0 : index
    %26 = vector.load %arg5[%c0_12, %c0_13] : memref<1x96xf32, #tpu.memory_space<vmem>>, vector<1x96xf32>
    %27 = vector.broadcast %26 : vector<1x96xf32> to vector<16x96xf32>
    %28 = arith.addf %25, %27 : vector<16x96xf32>
    %29 = arith.truncf %28 : vector<16x96xf32> to vector<16x96xbf16>
    %c0_14 = arith.constant 0 : index
    %c0_15 = arith.constant 0 : index
    %30 = vector.load %arg6[%c0_14, %c0_15] : memref<16x96xbf16, #tpu.memory_space<vmem>>, vector<16x96xbf16>
    tpu.vector_store %arg6[%c0_14, %c0_15], %29 {strides = array<i32>} : memref<16x96xbf16, #tpu.memory_space<vmem>>, vector<16x96xbf16>,
    return
  }
  func.func @transform_0(%arg0: i32) -> (i32, i32) {
    %c0_i32 = arith.constant 0 : i32
    %c0_i32_0 = arith.constant 0 : i32
    return %arg0, %c0_i32 : i32, i32
  }
  func.func @transform_1(%arg0: i32) -> (i32, i32) {
    %c0_i32 = arith.constant 0 : i32
    %c0_i32_0 = arith.constant 0 : i32
    %c0_i32_1 = arith.constant 0 : i32
    return %c0_i32, %c0_i32_0 : i32, i32
  }
  func.func @transform_2(%arg0: i32) -> (i32, i32) {
    %c0_i32 = arith.constant 0 : i32
    %c0_i32_0 = arith.constant 0 : i32
    %c0_i32_1 = arith.constant 0 : i32
    return %c0_i32, %c0_i32_0 : i32, i32
  }
  func.func @transform_3(%arg0: i32) -> (i32, i32) {
    %c0_i32 = arith.constant 0 : i32
    %c0_i32_0 = arith.constant 0 : i32
    %c0_i32_1 = arith.constant 0 : i32
    return %c0_i32, %c0_i32_0 : i32, i32
  }
  func.func @transform_4(%arg0: i32) -> (i32, i32) {
    %c0_i32 = arith.constant 0 : i32
    %c0_i32_0 = arith.constant 0 : i32
    %c0_i32_1 = arith.constant 0 : i32
    return %c0_i32, %c0_i32_0 : i32, i32
  }
  func.func @transform_5(%arg0: i32) -> (i32, i32) {
    %c0_i32 = arith.constant 0 : i32
    %c0_i32_0 = arith.constant 0 : i32
    return %arg0, %c0_i32 : i32, i32
  }
}

</mosaic_0001>

<bundles_post_ra>
// kernel: tpu_custom_call.1
= control target key start
LH: loop header
LB: loop body
LE: loop exit
PB: predicated region body
PF: predicated region fallthrough
CT: control target
= control target key end

     0   :  { %10 = vsyncpa [#allocation3], 0  ;;  %s541_s0 = inlined_call_operand.hbm [shape: f32[16,32], index: 0, kind: input, shape index: {}]   ;;  %s542_s1 = inlined_call_operand.hbm [shape: f32[1,32], index: 1, kind: input, shape index: {}]   ;;  %s543_s2 = inlined_call_operand.hbm [shape: f32[1,32], index: 2, kind: input, shape index: {}]   ;;  %s544_s3 = inlined_call_operand.hbm [shape: bf16[32,96], index: 3, kind: input, shape index: {}]   ;;  %s545_s4 = inlined_call_operand.hbm [shape: f32[1,96], index: 4, kind: input, shape index: {}]   ;;  %s546_s5 = inlined_call_operand.hbm [shape: bf16[16,96], index: 5, kind: output, shape index: {}]  }
   0x1   :  { %11 = vsyncpa [#allocation6], 0 }
   0x2   :  { %12 = vsyncpa [#allocation9], 0 }
   0x3   :  { %13 = vsyncpa [#allocation4], 0  ;;  %s409_s18 = smov [#allocation5]   ;;  %s410_s20 = smov [#allocation8]  }
   0x4   :  { %s32_s19 = sshll.u32 %s409_s18, 4  ;;  %s51_s21 = sshll.u32 %s410_s20, 4  ;;  %s33_s19 = int_to_ptr.vmem [resolvable:$true] %s32_s19  ;;  %s451_s21 = int_to_ptr.vmem [resolvable:$true] %s51_s21 }
   0x5   :  { %s269_s24 = scalar_lea.hbm %s542_s1, 16 }
   0x6   :  { %p270_p0 = scmp.ne.s32.totalorder %s542_s1, %s269_s24  ;;  %p273_p1 = scmp.lt.u32.totalorder %s269_s24, %s542_s1 }
   0x8   :  { %p275_p2 = pnand %p273_p1, %p270_p0 }
   0xa   :  { %278 = shalt.err (!%p275_p2)
}
   0xb   :  { %s279_s29 = scalar_lea.vmem %s33_s19, 16  ;;  %s283_s30 = scalar_lea.vmem %s33_s19, 32 }
   0xc   :  { %p280_p3 = scmp.ne.s32.totalorder %s33_s19, %s279_s29  ;;  %p284_p4 = scmp.lt.s32.totalorder %s33_s19, %s33_s19 }
   0xd   :  { %p285_p5 = scmp.lt.s32.totalorder %s283_s30, %s279_s29 }
   0xf   :  { %p286_p6 = por %p285_p5, %p284_p4 }
  0x11   :  { %p287_p7 = pnand %p286_p6, %p280_p3 }
  0x13   :  { %290 = shalt.err (!%p287_p7)
}
  0x14   :  { %35 = dma.hbm_to_vmem [thread:$0]  %s542_s1, 16, %s33_s19, [#allocation6]  }
  0x15   :  { %s291_s10 = scalar_lea.hbm %s544_s3, 256 }
  0x16   :  { %p292_p8 = scmp.ne.s32.totalorder %s544_s3, %s291_s10  ;;  %p295_p9 = scmp.lt.u32.totalorder %s291_s10, %s544_s3 }
  0x18   :  { %p297_p10 = pnand %p295_p9, %p292_p8 }
  0x1a   :  { %300 = shalt.err (!%p297_p10)
}
  0x1b   :  { %s301_s15 = scalar_lea.vmem %s451_s21, 256  ;;  %p306_p12 = scmp.lt.s32.totalorder %s451_s21, %s451_s21 }
  0x1c   :  { %p302_p11 = scmp.ne.s32.totalorder %s451_s21, %s301_s15  ;;  %p307_p13 = scmp.lt.s32.totalorder %s301_s15, %s301_s15 }
  0x1e   :  { %p308_p0 = por %p307_p13, %p306_p12 }
  0x20   :  { %p309_p1 = pnand %p308_p0, %p302_p11 }
  0x22   :  { %312 = shalt.err (!%p309_p1)
}
  0x23   :  { %s411_s1 = smov 64   ;;  %s412_s16 = smov 4  }
  0x24   :  { %57 = dma.hbm_to_vmem [thread:$0]  %s544_s3, 256, %s451_s21, [#allocation9], %s411_s1, %s411_s1, %s412_s16  }
  0x25   :  { %s413_s19 = smov [#allocation2]   ;;  %s313_s24 = scalar_lea.hbm %s541_s0, 256 }
  0x26   :  { %s19_s20 = sshll.u32 %s413_s19, 4  ;;  %p314_p2 = scmp.ne.s32.totalorder %s541_s0, %s313_s24  ;;  %s20_s20 = int_to_ptr.vmem [resolvable:$true] %s19_s20 }
  0x27   :  { %p317_p3 = scmp.lt.u32.totalorder %s313_s24, %s541_s0 }
  0x29   :  { %p319_p4 = pnand %p317_p3, %p314_p2 }
  0x2b   :  { %322 = shalt.err (!%p319_p4)
}
  0x2c   :  { %s323_s29 = scalar_lea.vmem %s20_s20, 256  ;;  %p328_p6 = scmp.lt.s32.totalorder %s20_s20, %s20_s20 }
  0x2d   :  { %p324_p5 = scmp.ne.s32.totalorder %s20_s20, %s323_s29  ;;  %p329_p7 = scmp.lt.s32.totalorder %s323_s29, %s323_s29 }
  0x2f   :  { %p330_p8 = por %p329_p7, %p328_p6 }
  0x31   :  { %p331_p9 = pnand %p330_p8, %p324_p5 }
  0x33   :  { %334 = shalt.err (!%p331_p9)
}
  0x34   :  { %s414_s3 = smov 128   ;;  %s415_s21 = smov 8  }
  0x35   :  { %25 = dma.hbm_to_vmem [thread:$0]  %s541_s0, 256, %s20_s20, [#allocation3], %s414_s3, %s414_s3, %s415_s21  }
  0x36   :  { %s416_s7 = smov [#allocation7]   ;;  %s417_s9 = smov [#allocation10]  }
  0x37   :  { %s42_s8 = sshll.u32 %s416_s7, 4  ;;  %s64_s10 = sshll.u32 %s417_s9, 4  ;;  %s43_s8 = int_to_ptr.vmem [resolvable:$true] %s42_s8  ;;  %s65_s10 = int_to_ptr.vmem [resolvable:$true] %s64_s10 }
  0x38   :  { %s335_s13 = scalar_lea.hbm %s543_s2, 16 }
  0x39   :  { %p336_p10 = scmp.ne.s32.totalorder %s543_s2, %s335_s13  ;;  %p339_p11 = scmp.lt.u32.totalorder %s335_s13, %s543_s2 }
  0x3b   :  { %p341_p12 = pnand %p339_p11, %p336_p10 }
  0x3d   :  { %344 = shalt.err (!%p341_p12)
}
  0x3e   :  { %s345_s0 = scalar_lea.vmem %s43_s8, 16  ;;  %s349_s19 = scalar_lea.vmem %s43_s8, 32 }
  0x3f   :  { %p346_p13 = scmp.ne.s32.totalorder %s43_s8, %s345_s0  ;;  %p350_p0 = scmp.lt.s32.totalorder %s43_s8, %s43_s8 }
  0x40   :  { %p351_p1 = scmp.lt.s32.totalorder %s349_s19, %s345_s0 }
  0x42   :  { %p352_p2 = por %p351_p1, %p350_p0 }
  0x44   :  { %p353_p3 = pnand %p352_p2, %p346_p13 }
  0x46   :  { %356 = shalt.err (!%p353_p3)
}
  0x47   :  { %45 = dma.hbm_to_vmem [thread:$0]  %s543_s2, 16, %s43_s8, [#allocation6]  }
  0x48   :  { %s357_s25 = scalar_lea.hbm %s545_s4, 16 }
  0x49   :  { %p358_p4 = scmp.ne.s32.totalorder %s545_s4, %s357_s25  ;;  %p361_p5 = scmp.lt.u32.totalorder %s357_s25, %s545_s4 }
  0x4b   :  { %p363_p6 = pnand %p361_p5, %p358_p4 }
  0x4d   :  { %366 = shalt.err (!%p363_p6)
}
  0x4e   :  { %s367_s3 = scalar_lea.vmem %s65_s10, 16  ;;  %s371_s21 = scalar_lea.vmem %s65_s10, 32 }
  0x4f   :  { %p368_p7 = scmp.ne.s32.totalorder %s65_s10, %s367_s3  ;;  %p372_p8 = scmp.lt.s32.totalorder %s65_s10, %s65_s10 }
  0x50   :  { %p373_p9 = scmp.lt.s32.totalorder %s371_s21, %s367_s3 }
  0x52   :  { %p374_p10 = por %p373_p9, %p372_p8 }
  0x54   :  { %p375_p11 = pnand %p374_p10, %p368_p7 }
  0x56   :  { %378 = shalt.err (!%p375_p11)
}
  0x57   :  { %67 = dma.hbm_to_vmem [thread:$0]  %s545_s4, 16, %s65_s10, [#allocation9]  }
  0x58   :  { %401 = dma.done.wait [#allocation3], 256  }
  0x59   :  { %402 = vsyncadd [#allocation3], 4294967040 }
  0x5a   :  { %403 = dma.done.wait [#allocation6], 32  }
  0x5b   :  { %404 = vsyncadd [#allocation6], 4294967264 }
  0x5c   :  { %405 = dma.done.wait [#allocation9], 272  }
  0x5d   :  { %406 = vsyncadd [#allocation9], 4294967024  ;;  %vm86_vm0 = vcmask 261120   ;;  %v84_v0 = vld [vmem:[#allocation2] sm:$0xff]  ;;  %v85_v1 = vld [vmem:[#allocation2 + $0x8] sm:$0xff]  ;;  %v418_v15 = vmov 0.0  }
  0x5e   :  { %v87_v2 = vsel %vm86_vm0, %v84_v0, 0.0  ;;  %v90_v3 = vsel %vm86_vm0, %v85_v1, 0.0  ;;  %v263_v14 = vld [vmem:[#allocation8] sm:$0xff]   ;;  %243 = vmatprep.subr.bf16.mxu0 %v418_v15  ;;  %v264_v16 = vld [vmem:[#allocation8 + $0x8] sm:$0xff]   ;;  %vm419_vm1 = vmmov 0   ;;  %vm208_vm2 = vcmask 781312  }
  0x5f   :  { %88 = vadd.xlane.f32.xlu0 %v87_v2  ;;  %244 = vmatpush3.bf16.msra.mxu0 %v263_v14  ;;  %v230_v25 = vld [vmem:[#allocation5] ss:$0 sm:$0xff]  ;;  %v231_v29 = vld [vmem:[#allocation7] ss:$0 sm:$0xff]  ;;  %v232_v34 = vld [vmem:[#allocation10] ss:$0 sm:$0xff] }
  0x60   :  { %247 = vmatprep.mubr.msk.bf16.mxu0 %vm419_vm1, %v418_v15  ;;  %245 = vmatprep.subr.bf16.mxu0 %v418_v15  ;;  %s420_s4 = smov [#allocation11]  }
  0x61   :  { %s216_s6 = sshll.u32 %s420_s4, 4  ;;  %s217_s6 = int_to_ptr.vmem [resolvable:$true] %s216_s6 }
  0x62   :  { %s379_s7 = scalar_lea.vmem %s217_s6, 128  ;;  %p384_p13 = scmp.lt.s32.totalorder %s217_s6, %s217_s6 }
  0x63   :  { %91 = vadd.xlane.f32.xlu0 %v90_v3  ;;  %246 = vmatpush3.bf16.msra.mxu0 %v264_v16  ;;  %p380_p12 = scmp.ne.s32.totalorder %s217_s6, %s379_s7  ;;  %p385_p0 = scmp.lt.s32.totalorder %s379_s7, %s379_s7 }
  0x65   :  { %p386_p1 = por %p385_p0, %p384_p13 }
  0x67   :  { %p387_p2 = pnand %p386_p1, %p380_p12 }
  0xec   :  { %v89_v4 = vpop.xlane.xlu0 %88 }
  0xed   :  { %v94_v5 = vmul.f32 0.03125, %v89_v4 }
  0xef   :  { %v96_v6 = vsub.f32 %v84_v0, %v94_v5 }
  0xf0   :  { %v92_v7 = vpop.xlane.xlu0 %91 }
  0xf1   :  { %v95_v8 = vmul.f32 0.03125, %v92_v7  ;;  %v98_v9 = vmul.f32 %v96_v6, %v96_v6 }
  0xf3   :  { %v97_v10 = vsub.f32 %v85_v1, %v95_v8  ;;  %v100_v11 = vsel %vm86_vm0, %v98_v9, 0.0 }
  0xf4   :  { %101 = vadd.xlane.f32.xlu1 %v100_v11 }
  0xf5   :  { %v99_v12 = vmul.f32 %v97_v10, %v97_v10 }
  0xf7   :  { %v103_v13 = vsel %vm86_vm0, %v99_v12, 0.0 }
  0xf8   :  { %104 = vadd.xlane.f32.xlu1 %v103_v13 }
 0x181   :  { %v102_v17 = vpop.xlane.xlu1 %101 }
 0x182   :  { %v106_v18 = vmul.f32 0.03125, %v102_v17 }
 0x184   :  { %v108_v19 = vadd.f32 1e-05, %v106_v18 }
 0x185   :  { %v105_v20 = vpop.xlane.xlu1 %104 }
 0x186   :  { %265 = vrsqrt.f32 %v108_v19  ;;  %v107_v21 = vmul.f32 0.03125, %v105_v20 }
 0x188   :  { %v109_v22 = vadd.f32 1e-05, %v107_v21 }
 0x18a   :  { %267 = vrsqrt.f32 %v109_v22 }
 0x190   :  { %v266_v23 = vpop.eup %265 }
 0x191   :  { %v112_v24 = vmul.f32 %v266_v23, %v96_v6 }
 0x193   :  { %v121_v28 = vmul.f32 %v230_v25, %v112_v24 }
 0x194   :  { %v268_v26 = vpop.eup %267 }
 0x195   :  { %v113_v27 = vmul.f32 %v268_v26, %v97_v10  ;;  %v130_v31 = vadd.f32 %v231_v29, %v121_v28 }
 0x197   :  { %v122_v30 = vmul.f32 %v230_v25, %v113_v27 }
 0x199   :  { %v131_v32 = vadd.f32 %v231_v29, %v122_v30 }
 0x19b   :  { %v132_v33 = vpack.c.bf16 %v131_v32, %v130_v31 }
 0x19d   :  { %248 = vmatmul.mubr.msk.bf16.vlgmr.msra.gmra.mrb[0].mxu0 %vm86_vm0, %v132_v33 }
 0x270   :  { %v193_v35 = vpop.f32.mrb[0].mxu0 }
 0x271   :  { %v194_v36 = vadd.f32 %v232_v34, %v193_v35  ;;  %v249_v37 = vpop.f32.mrb[1].mxu0 }
 0x272   :  { %v196_v38 = vpop.f32.mrb[2].mxu0 }
 0x273   :  { %v238_v39 = vpack.c.bf16 %v194_v36, %v194_v36  ;;  %v197_v40 = vadd.f32 %v232_v34, %v196_v38  ;;  %v250_v41 = vpop.f32.mrb[3].mxu0 }
 0x275   :  { %v239_v42 = vpack.c.bf16 %v197_v40, %v197_v40  ;;  %209 = vst.msk [vmem:[#allocation11] sm:$0xf] %vm208_vm2, %v238_v39 }
 0x277   :  { %210 = vst.msk [vmem:[#allocation11 + $0x4] sm:$0xf] %vm208_vm2, %v239_v42 }
 0x278   :  { %390 = shalt.err (!%p387_p2)
}
 0x279   :  { %s391_s10 = scalar_lea.hbm %s546_s5, 128 }
 0x27a   :  { %p392_p3 = scmp.ne.s32.totalorder %s546_s5, %s391_s10  ;;  %p395_p4 = scmp.lt.u32.totalorder %s391_s10, %s546_s5 }
 0x27c   :  { %p397_p5 = pnand %p395_p4, %p392_p3 }
 0x27e   :  { %400 = shalt.err (!%p397_p5)
}
 0x27f   :  { %222 = dma.vmem_to_hbm [thread:$0]  %s217_s6, 128, %s546_s5, [#allocation4], %s411_s1, %s411_s1, %s412_s16  }
 0x280   :  { %407 = dma.done.wait [#allocation4], 128  }
 0x281   :  { %408 = vsyncadd [#allocation4], 4294967168 }
 0x282   :  { %226 = vsyncpa [#allocation3], 1 }
 0x283   :  { %227 = vsyncpa [#allocation6], 1 }
 0x284   :  { %228 = vsyncpa [#allocation9], 1 }
 0x285   :  { %229 = vsyncpa [#allocation4], 1 }

</bundles_post_ra>
